<compile_context>
chip_gen: v6e
topology: v6e:2x2x1
jax: 0.10.0
libtpu: 0.0.40
codegen_flags: <defaults>
</compile_context>

<pallas_src>
import functools

import jax
import jax.numpy as jnp
from jax import lax
from jax.experimental import pallas as pl
from jax.experimental.pallas import tpu as pltpu

BN_EPS = 1e-5
LANE = 128
O_SUB = 8          # fc2 output dim (2) padded to one sublane group
MAX_TB = 2048      # max batch rows per grid step (multiple of 128)


def domain_net_kernel(x_ref, w1_ref, w2_ref, bias_ref, o_ref, *, hp):
    # bias_ref is a packed (8, hp + 128) tile:
    #   row 0, lanes [0, hp)   -> fused fc1 bias (BN folded), zero-padded past H
    #   rows 0..7, lane hp     -> fc2 bias as a column (zero past O)
    b1 = bias_ref[0:1, :hp]          # (1, hp)
    b2 = bias_ref[:, hp:hp + 1]      # (8, 1)

    x = x_ref[...].astype(jnp.float32)
    # fc1 (BN pre-folded into weights/bias): [TB, F] @ [F, hp] + [1, hp]
    h = jnp.dot(x, w1_ref[...], preferred_element_type=jnp.float32) + b1
    h = jnp.maximum(h, 0.0)          # relu1
    # fc2, transposed output: [8, hp] . [TB, hp]^T -> [8, TB]  (lane-dense store)
    o_ref[...] = lax.dot_general(
        w2_ref[...], h,
        dimension_numbers=(((1,), (1,)), ((), ())),
        preferred_element_type=jnp.float32,
    ) + b2


def _round_up(n, m):
    return ((n + m - 1) // m) * m


def prepare_params(params):
    """One-time re-layout: fold BN into fc1, transpose fc1 to [in, out], pad the hidden
    axis to 128 lanes, keep fc2 un-transposed padded to (8, 128), and pack both biases
    into a single (8, Hp + 128) tile (b1 as row 0, b2 as a column at lane Hp).
    Call once, reuse across forwards."""
    H, F = params["w1"].shape          # (100, 128)
    O = params["w2"].shape[0]          # 2
    Hp = _round_up(H, LANE)            # 128
    assert O <= O_SUB, (O, O_SUB)

    # Fold inference-mode BatchNorm into fc1.
    scale = params["gamma"] / jnp.sqrt(params["running_var"] + BN_EPS)            # [H]
    w1_fused = params["w1"].T.astype(jnp.float32) * scale[None, :]                # [F, H]
    b1_fused = (params["b1"] - params["running_mean"]) * scale + params["beta"]   # [H]

    w1p = jnp.zeros((F, Hp), jnp.float32).at[:, :H].set(w1_fused)
    w2p = jnp.zeros((O_SUB, Hp), jnp.float32).at[:O, :H].set(params["w2"].astype(jnp.float32))

    bias_pack = jnp.zeros((O_SUB, Hp + LANE), jnp.float32)
    bias_pack = bias_pack.at[0, :H].set(b1_fused.astype(jnp.float32))
    bias_pack = bias_pack.at[:O, Hp].set(params["b2"].astype(jnp.float32))

    return {
        "w1": jax.device_put(w1p),
        "w2": jax.device_put(w2p),
        "bias": jax.device_put(bias_pack),
        "dims": (F, H, O, Hp),
    }


def _choose_tb(batch):
    """Pick the batch-tile size.

    - Huge batches: MAX_TB-row tiles (multiple of 128 -> lane-dense output stores).
    - Mid-size batches: split into ~2 lane-aligned tiles so a 2-TensorCore chip (v7x)
      can shard the "parallel" grid axis across both cores.
    - Small batches: a single full-array block (no (8,128) divisibility requirement).
    """
    if batch > MAX_TB:
        return MAX_TB
    if batch >= 2 * LANE:
        return pl.cdiv(pl.cdiv(batch, 2), LANE) * LANE
    return batch


def domain_net_small_image(x, prepared):
    """x: [B, input_size] float32 (or bfloat16).  prepared: output of prepare_params."""
    B, F = x.shape
    F_, H, O, Hp = prepared["dims"]
    assert F == F_, (F, F_)

    TB = _choose_tb(B)
    n_steps = pl.cdiv(B, TB)
    kernel = functools.partial(domain_net_kernel, hp=Hp)
    weight_bytes = (F * Hp + O_SUB * Hp + O_SUB * (Hp + LANE)) * 4

    out_t = pl.pallas_call(
        kernel,
        out_shape=jax.ShapeDtypeStruct((O_SUB, B), jnp.float32),
        grid=(n_steps,),
        in_specs=[
            pl.BlockSpec((TB, F), lambda i: (i, 0)),             # x: streamed over batch
            pl.BlockSpec((F, Hp), lambda i: (0, 0)),             # w1 (BN-folded): resident
            pl.BlockSpec((O_SUB, Hp), lambda i: (0, 0)),         # w2: resident
            pl.BlockSpec((O_SUB, Hp + LANE), lambda i: (0, 0)),  # packed biases: resident
        ],
        out_specs=pl.BlockSpec((O_SUB, TB), lambda i: (0, i)),   # transposed, lane-dense
        compiler_params=pltpu.CompilerParams(
            dimension_semantics=("parallel",),
        ),
        cost_estimate=pl.CostEstimate(
            flops=2 * B * (F * H + H * O),
            transcendentals=0,
            bytes_accessed=B * (F * x.dtype.itemsize + O_SUB * 4) + weight_bytes,
        ),
    )(x, prepared["w1"], prepared["w2"], prepared["bias"])

    # Tiny (2, B) slice + transpose back to the module's (B, 2) layout.
    return out_t[:O, :].T


def init_params(key, input_size=128, output_size=100, num_classes=2):
    """Deterministic synthetic parameters (PyTorch shape conventions)."""
    k1, k2, k3, k4, k5, k6, k7, k8 = jax.random.split(key, 8)
    return {
        "w1": jax.random.normal(k1, (output_size, input_size), jnp.float32) * 0.05,
        "b1": jax.random.normal(k2, (output_size,), jnp.float32) * 0.05,
        "gamma": 1.0 + 0.1 * jax.random.normal(k3, (output_size,), jnp.float32),
        "beta": 0.1 * jax.random.normal(k4, (output_size,), jnp.float32),
        "running_mean": 0.1 * jax.random.normal(k5, (output_size,), jnp.float32),
        "running_var": 1.0 + 0.1 * jax.random.uniform(k6, (output_size,), jnp.float32),
        "w2": jax.random.normal(k7, (num_classes, output_size), jnp.float32) * 0.05,
        "b2": jax.random.normal(k8, (num_classes,), jnp.float32) * 0.05,
    }


def reference_forward(x, p):
    # TODO(synk): BatchNorm1d is implemented in inference (eval) mode using running
    # statistics; PyTorch's training-mode batch-statistics path is not reproduced.
    h = x @ p["w1"].T + p["b1"]
    h = (h - p["running_mean"]) / jnp.sqrt(p["running_var"] + BN_EPS) * p["gamma"] + p["beta"]
    h = jnp.maximum(h, 0.0)
    return h @ p["w2"].T + p["b2"]


if __name__ == "__main__":
    key = jax.random.PRNGKey(0)
    kx, kp, kx2 = jax.random.split(key, 3)

    INPUT_SIZE = 128
    params = init_params(kp, input_size=INPUT_SIZE)
    prepared = prepare_params(params)  # one-time re-layout / BN fold

    # Small-batch check (module-consistent shape): single full-array block, no padding.
    B = 2
    x = jax.random.normal(kx, (B, INPUT_SIZE), jnp.float32)
    out = jax.block_until_ready(domain_net_small_image(x, prepared))
    ref = reference_forward(x, params)
    assert out.shape == (B, 2), out.shape
    assert jnp.allclose(out, ref, atol=1e-4, rtol=1e-4), (out, ref)

    # Larger, non-multiple-of-tile batch exercises the multi-step "parallel" grid with a
    # ragged (masked) final block and the transposed lane-dense output path.
    B2 = 1000
    x2 = jax.random.normal(kx2, (B2, INPUT_SIZE), jnp.float32)
    out2 = jax.block_until_ready(domain_net_small_image(x2, prepared))
    ref2 = reference_forward(x2, params)
    assert out2.shape == (B2, 2), out2.shape
    assert jnp.allclose(out2, ref2, atol=1e-4, rtol=1e-4)

    print("KERNEL_OK")
</pallas_src>

<mosaic_0001>
module attributes {stable_mosaic.version = 11 : i64} {
  func.func @domain_net_kernel(%arg0: i32, %arg1: memref<2x128xf32, #tpu.memory_space<vmem>>, %arg2: memref<128x128xf32, #tpu.memory_space<vmem>>, %arg3: memref<8x128xf32, #tpu.memory_space<vmem>>, %arg4: memref<8x256xf32, #tpu.memory_space<vmem>>, %arg5: memref<8x2xf32, #tpu.memory_space<vmem>>) attributes {dimension_semantics = [#tpu.dimension_semantics<parallel>], iteration_bounds = array<i64: 1>, scalar_prefetch = 0 : i64, scratch_operands = 0 : i64, tpu.core_type = #tpu.core_type<tc>, window_params = [{transform_indices = @transform_0, window_bounds = array<i64: 2, 128>}, {pipeline_mode = #tpu.pipeline_mode<synchronous>, transform_indices = @transform_1, window_bounds = array<i64: 128, 128>}, {pipeline_mode = #tpu.pipeline_mode<synchronous>, transform_indices = @transform_2, window_bounds = array<i64: 8, 128>}, {pipeline_mode = #tpu.pipeline_mode<synchronous>, transform_indices = @transform_3, window_bounds = array<i64: 8, 256>}, {transform_indices = @transform_4, window_bounds = array<i64: 8, 2>}]} {
    %c0 = arith.constant 0 : index
    %c0_0 = arith.constant 0 : index
    %0 = vector.load %arg4[%c0, %c0_0] : memref<8x256xf32, #tpu.memory_space<vmem>>, vector<1x128xf32>
    %c0_1 = arith.constant 0 : index
    %c128 = arith.constant 128 : index
    %1 = vector.load %arg4[%c0_1, %c128] : memref<8x256xf32, #tpu.memory_space<vmem>>, vector<8x1xf32>
    %c0_2 = arith.constant 0 : index
    %c0_3 = arith.constant 0 : index
    %2 = vector.load %arg1[%c0_2, %c0_3] : memref<2x128xf32, #tpu.memory_space<vmem>>, vector<2x128xf32>
    %c0_4 = arith.constant 0 : index
    %c0_5 = arith.constant 0 : index
    %3 = vector.load %arg2[%c0_4, %c0_5] : memref<128x128xf32, #tpu.memory_space<vmem>>, vector<128x128xf32>
    %cst = arith.constant dense<0.000000e+00> : vector<2x128xf32>
    %4 = tpu.matmul %2, %3, %cst {dimension_numbers = #tpu.dot_dimension_numbers<[1], [0], [0], [1], [0, 0, 1, 1], [], []>} : vector<2x128xf32>, vector<128x128xf32>, vector<2x128xf32> -> vector<2x128xf32>
    %5 = vector.broadcast %0 : vector<1x128xf32> to vector<2x128xf32>
    %6 = arith.addf %4, %5 : vector<2x128xf32>
    %cst_6 = arith.constant 0.000000e+00 : f32
    %7 = vector.broadcast %cst_6 : f32 to vector<2x128xf32>
    %8 = arith.maximumf %6, %7 : vector<2x128xf32>
    %c0_7 = arith.constant 0 : index
    %c0_8 = arith.constant 0 : index
    %9 = vector.load %arg3[%c0_7, %c0_8] : memref<8x128xf32, #tpu.memory_space<vmem>>, vector<8x128xf32>
    %cst_9 = arith.constant dense<0.000000e+00> : vector<8x2xf32>
    %10 = tpu.matmul %9, %8, %cst_9 {dimension_numbers = #tpu.dot_dimension_numbers<[1], [1], [0], [0], [0, 0, 1, 0], [], []>} : vector<8x128xf32>, vector<2x128xf32>, vector<8x2xf32> -> vector<8x2xf32>
    %11 = vector.broadcast %1 : vector<8x1xf32> to vector<8x2xf32>
    %12 = arith.addf %10, %11 : vector<8x2xf32>
    %c0_10 = arith.constant 0 : index
    %c0_11 = arith.constant 0 : index
    %13 = vector.load %arg5[%c0_10, %c0_11] : memref<8x2xf32, #tpu.memory_space<vmem>>, vector<8x2xf32>
    tpu.vector_store %arg5[%c0_10, %c0_11], %12 {strides = array<i32>} : memref<8x2xf32, #tpu.memory_space<vmem>>, vector<8x2xf32>,
    return
  }
  func.func @transform_0(%arg0: i32) -> (i32, i32) {
    %c0_i32 = arith.constant 0 : i32
    %c0_i32_0 = arith.constant 0 : i32
    return %arg0, %c0_i32 : i32, i32
  }
  func.func @transform_1(%arg0: i32) -> (i32, i32) {
    %c0_i32 = arith.constant 0 : i32
    %c0_i32_0 = arith.constant 0 : i32
    %c0_i32_1 = arith.constant 0 : i32
    return %c0_i32, %c0_i32_0 : i32, i32
  }
  func.func @transform_2(%arg0: i32) -> (i32, i32) {
    %c0_i32 = arith.constant 0 : i32
    %c0_i32_0 = arith.constant 0 : i32
    %c0_i32_1 = arith.constant 0 : i32
    return %c0_i32, %c0_i32_0 : i32, i32
  }
  func.func @transform_3(%arg0: i32) -> (i32, i32) {
    %c0_i32 = arith.constant 0 : i32
    %c0_i32_0 = arith.constant 0 : i32
    %c0_i32_1 = arith.constant 0 : i32
    return %c0_i32, %c0_i32_0 : i32, i32
  }
  func.func @transform_4(%arg0: i32) -> (i32, i32) {
    %c0_i32 = arith.constant 0 : i32
    %c0_i32_0 = arith.constant 0 : i32
    return %c0_i32, %arg0 : i32, i32
  }
}

</mosaic_0001>

<bundles_post_ra>
// kernel: tpu_custom_call.1
= control target key start
LH: loop header
LB: loop body
LE: loop exit
PB: predicated region body
PF: predicated region fallthrough
CT: control target
= control target key end

     0   :  { %9 = vsyncpa [#allocation3], 0  ;;  %s445_s0 = inlined_call_operand.hbm [shape: f32[2,128], index: 0, kind: input, shape index: {}]   ;;  %s446_s1 = inlined_call_operand.hbm [shape: f32[128,128], index: 1, kind: input, shape index: {}]   ;;  %s447_s2 = inlined_call_operand.hbm [shape: f32[8,128], index: 2, kind: input, shape index: {}]   ;;  %s448_s3 = inlined_call_operand.hbm [shape: f32[8,256], index: 3, kind: input, shape index: {}]   ;;  %s449_s4 = inlined_call_operand.vmem [shape: f32[8,2], index: 4, kind: output, shape index: {}]  }
   0x1   :  { %10 = vsyncpa [#allocation5], 0 }
   0x2   :  { %11 = vsyncpa [#allocation8], 0  ;;  %s396_s15 = smov [#allocation4]  }
   0x3   :  { %s27_s16 = sshll.u32 %s396_s15, 4  ;;  %s28_s16 = int_to_ptr.vmem [resolvable:$true] %s27_s16 }
   0x4   :  { %s318_s17 = scalar_lea.vmem %s28_s16, 2048  ;;  %p323_p1 = scmp.lt.s32.totalorder %s28_s16, %s28_s16 }
   0x5   :  { %p319_p0 = scmp.ne.s32.totalorder %s28_s16, %s318_s17  ;;  %p324_p2 = scmp.lt.s32.totalorder %s318_s17, %s318_s17 }
   0x7   :  { %p325_p3 = por %p324_p2, %p323_p1 }
   0x9   :  { %p326_p4 = pnand %p325_p3, %p319_p0 }
   0xb   :  { %329 = shalt.err (!%p326_p4)
}
   0xc   :  { %s397_s18 = smov 128   ;;  %s398_s19 = smov 8  }
   0xd   :  { %33 = dma.hbm_to_vmem [thread:$0]  %s446_s1, 2048, %s28_s16, [#allocation5], %s397_s18, %s397_s18, %s398_s19  }
   0xe   :  { %s399_s22 = smov [#allocation2]   ;;  %s400_s24 = smov [#allocation6]  }
   0xf   :  { %s18_s23 = sshll.u32 %s399_s22, 4  ;;  %s40_s25 = sshll.u32 %s400_s24, 4  ;;  %s19_s23 = int_to_ptr.vmem [resolvable:$true] %s18_s23  ;;  %s41_s25 = int_to_ptr.vmem [resolvable:$true] %s40_s25 }
  0x10   :  { %s338_s26 = scalar_lea.vmem %s19_s23, 32  ;;  %p343_p6 = scmp.lt.s32.totalorder %s19_s23, %s19_s23 }
  0x11   :  { %p339_p5 = scmp.ne.s32.totalorder %s19_s23, %s338_s26  ;;  %p344_p7 = scmp.lt.s32.totalorder %s338_s26, %s338_s26 }
  0x13   :  { %p345_p8 = por %p344_p7, %p343_p6 }
  0x15   :  { %p346_p9 = pnand %p345_p8, %p339_p5 }
  0x17   :  { %349 = shalt.err (!%p346_p9)
}
  0x18   :  { %21 = dma.hbm_to_vmem [thread:$0]  %s445_s0, 32, %s19_s23, [#allocation3]  }
  0x19   :  { %s358_s29 = scalar_lea.vmem %s41_s25, 128  ;;  %p363_p11 = scmp.lt.s32.totalorder %s41_s25, %s41_s25 }
  0x1a   :  { %p359_p10 = scmp.ne.s32.totalorder %s41_s25, %s358_s29  ;;  %p364_p12 = scmp.lt.s32.totalorder %s358_s29, %s358_s29 }
  0x1c   :  { %p365_p13 = por %p364_p12, %p363_p11 }
  0x1e   :  { %p366_p0 = pnand %p365_p13, %p359_p10 }
  0x20   :  { %369 = shalt.err (!%p366_p0)
}
  0x21   :  { %43 = dma.hbm_to_vmem [thread:$0]  %s447_s2, 128, %s41_s25, [#allocation5]  }
  0x22   :  { %s401_s5 = smov [#allocation7]  }
  0x23   :  { %s50_s6 = sshll.u32 %s401_s5, 4  ;;  %s51_s6 = int_to_ptr.vmem [resolvable:$true] %s50_s6 }
  0x24   :  { %s378_s7 = scalar_lea.vmem %s51_s6, 256  ;;  %p383_p2 = scmp.lt.s32.totalorder %s51_s6, %s51_s6 }
  0x25   :  { %p379_p1 = scmp.ne.s32.totalorder %s51_s6, %s378_s7  ;;  %p384_p3 = scmp.lt.s32.totalorder %s378_s7, %s378_s7 }
  0x27   :  { %p385_p4 = por %p384_p3, %p383_p2 }
  0x29   :  { %p386_p5 = pnand %p385_p4, %p379_p1 }
  0x2b   :  { %389 = shalt.err (!%p386_p5)
}
  0x2c   :  { %53 = dma.hbm_to_vmem [thread:$0]  %s448_s3, 256, %s51_s6, [#allocation8]  }
  0x2d   :  { %390 = dma.done.wait [#allocation3], 32  }
  0x2e   :  { %391 = vsyncadd [#allocation3], 4294967264 }
  0x2f   :  { %392 = dma.done.wait [#allocation5], 2176  }
  0x30   :  { %393 = vsyncadd [#allocation5], 4294965120 }
  0x31   :  { %394 = dma.done.wait [#allocation8], 256  }
  0x32   :  { %395 = vsyncadd [#allocation8], 4294967040  ;;  %v402_v0 = vmov 0.0   ;;  %vm403_vm0 = vmmov 0   ;;  %v84_v1 = vld [vmem:[#allocation4 + $0x78] sm:$0xff]  ;;  %v83_v2 = vld [vmem:[#allocation4 + $0x70] sm:$0xff] }
  0x33   :  { %260 = vmatprep.subr.mxu0 %v402_v0  ;;  %292 = vmatprep.mubr.msk.f32.mxu0 %vm403_vm0, %v402_v0  ;;  %v82_v3 = vld [vmem:[#allocation4 + $0x68] sm:$0xff]  ;;  %v81_v4 = vld [vmem:[#allocation4 + $0x60] sm:$0xff]  ;;  %v80_v5 = vld [vmem:[#allocation4 + $0x58] sm:$0xff]  ;;  %v404_v19 = vmov 0   ;;  %vm232_vm1 = vcmask 15360  }
  0x34   :  { %295 = vmatprep.subr.mxu1 %v402_v0  ;;  %297 = vmatprep.mubr.msk.f32.mxu1 %vm403_vm0, %v402_v0  ;;  %v79_v6 = vld [vmem:[#allocation4 + $0x50] sm:$0xff]  ;;  %v78_v7 = vld [vmem:[#allocation4 + $0x48] sm:$0xff]  ;;  %v77_v8 = vld [vmem:[#allocation4 + $0x40] sm:$0xff] }
  0x35   :  { %261 = vmatpush3.msra.mxu0 %v84_v1  ;;  %v76_v9 = vld [vmem:[#allocation4 + $0x38] sm:$0xff]  ;;  %v75_v10 = vld [vmem:[#allocation4 + $0x30] sm:$0xff]  ;;  %v74_v11 = vld [vmem:[#allocation4 + $0x28] sm:$0xff]  ;;  %309 = vset.pattern.permute.xlu0 %v404_v19 }
  0x36   :  { %262 = vmatprep.subr.mxu0 %v402_v0  ;;  %v73_v12 = vld [vmem:[#allocation4 + $0x20] sm:$0xff]  ;;  %v72_v13 = vld [vmem:[#allocation4 + $0x18] sm:$0xff]  ;;  %v71_v14 = vld [vmem:[#allocation4 + $0x10] sm:$0xff] }
  0x37   :  { %263 = vmatpush3.msra.mxu0 %v83_v2  ;;  %v70_v15 = vld [vmem:[#allocation4 + $0x8] sm:$0xff]  ;;  %v69_v16 = vld [vmem:[#allocation4] sm:$0xff]  ;;  %v68_v17 = vld [vmem:[#allocation2] sm:$0x3] }
  0x38   :  { %264 = vmatprep.subr.mxu0 %v402_v0  ;;  %v67_v18 = vld [vmem:[#allocation7 + $0x8] sm:$0xff]  ;;  %v66_v20 = vld [vmem:[#allocation7] ss:$0 sm:$0xff]  ;;  %v156_v25 = vld [vmem:[#allocation6] sm:$0xff] }
  0x39   :  { %265 = vmatpush3.msra.mxu0 %v82_v3  ;;  %159 = vperm.xlu0 %309, %v67_v18  }
  0x3a   :  { %266 = vmatprep.subr.mxu0 %v402_v0 }
  0x3b   :  { %267 = vmatpush3.msra.mxu0 %v81_v4 }
  0x3c   :  { %268 = vmatprep.subr.mxu0 %v402_v0 }
  0x3d   :  { %269 = vmatpush3.msra.mxu0 %v80_v5 }
  0x3e   :  { %270 = vmatprep.subr.mxu0 %v402_v0 }
  0x3f   :  { %271 = vmatpush3.msra.mxu0 %v79_v6 }
  0x40   :  { %272 = vmatprep.subr.mxu0 %v402_v0 }
  0x41   :  { %273 = vmatpush3.msra.mxu0 %v78_v7 }
  0x42   :  { %274 = vmatprep.subr.mxu0 %v402_v0 }
  0x43   :  { %275 = vmatpush3.msra.mxu0 %v77_v8 }
  0x44   :  { %276 = vmatprep.subr.mxu0 %v402_v0 }
  0x45   :  { %277 = vmatpush3.msra.mxu0 %v76_v9 }
  0x46   :  { %278 = vmatprep.subr.mxu0 %v402_v0 }
  0x47   :  { %279 = vmatpush3.msra.mxu0 %v75_v10 }
  0x48   :  { %280 = vmatprep.subr.mxu0 %v402_v0 }
  0x49   :  { %281 = vmatpush3.msra.mxu0 %v74_v11 }
  0x4a   :  { %282 = vmatprep.subr.mxu0 %v402_v0 }
  0x4b   :  { %283 = vmatpush3.msra.mxu0 %v73_v12 }
  0x4c   :  { %284 = vmatprep.subr.mxu0 %v402_v0 }
  0x4d   :  { %285 = vmatpush3.msra.mxu0 %v72_v13 }
  0x4e   :  { %286 = vmatprep.subr.mxu0 %v402_v0 }
  0x4f   :  { %287 = vmatpush3.msra.mxu0 %v71_v14 }
  0x50   :  { %288 = vmatprep.subr.mxu0 %v402_v0 }
  0x51   :  { %289 = vmatpush3.msra.mxu0 %v70_v15 }
  0x52   :  { %290 = vmatprep.subr.mxu0 %v402_v0 }
  0x53   :  { %291 = vmatpush3.msra.mxu0 %v69_v16 }
  0x54   :  { %293 = vmatmul.mubr.f32.vlgmr.msra.gmra.mxu0 %v68_v17 }
  0xb4   :  { %v160_v26 = vpop.permute.xlu0 %159 }
 0x114   :  { %v151_v21 = vpop.f32.mrf.mxu0 }
 0x115   :  { %v152_v22 = vadd.f32 %v151_v21, %v66_v20 }
 0x116   :  { %v294_v23 = vpop.f32.mrf.mxu0 }
 0x117   :  { %v155_v24 = vmax.f32 %v152_v22, 0.0 }
 0x119   :  { %296 = vmatpush3.xpose.msra.mxu1 %v155_v24 }
 0x11c   :  { %298 = vmatmul.mubr.f32.vlgmr.msra.gmra.mxu1 %v156_v25 }
 0x1dc   :  { %v228_v27 = vpop.f32.mrf.mxu1 }
 0x1dd   :  { %v229_v28 = vadd.f32 %v228_v27, %v160_v26 }
 0x1de   :  { %v299_v29 = vpop.f32.mrf.mxu1 }
 0x1df   :  { %233 = vst.msk [vmem:[%s449_s4] sm:$0xff] %vm232_vm1, %v229_v28 }
 0x1e0   :  { %238 = vsyncpa [#allocation3], 1 }
 0x1e1   :  { %239 = vsyncpa [#allocation5], 1 }
 0x1e2   :  { %240 = vsyncpa [#allocation8], 1 }

</bundles_post_ra>
